<compile_context>
chip_gen: v6e
topology: v6e:2x2x1
jax: 0.10.0
libtpu: 0.0.40
codegen_flags: <defaults>
</compile_context>

<pallas_src>
import functools

import jax
import jax.numpy as jnp
from jax.experimental import pallas as pl
from jax.experimental.pallas import tpu as pltpu

EPS = 1e-6

# Conservative budget for double-buffered *inputs* resident in VMEM (bytes).
# Keeps tiles comfortably inside the default scoped VMEM on v5e/v6e/v7x.
_VMEM_INPUT_BUDGET = 16 * 1024 * 1024
# Upper bound on the batch tile; per-step DMAs are already large well below this.
_MAX_BATCH_TILE = 4096


def _jaccard_iou_kernel(preds_ref, targets_ref, iou_ref, *, eps):
    # preds_ref / targets_ref: (TB, C) in the native layout (classes on lanes).
    p = jax.nn.sigmoid(preds_ref[...].astype(jnp.float32))
    t = targets_ref[...].astype(jnp.float32)

    pt = p * t
    # Cross-lane reduce over the class axis -> (TB, 1).  Goes to the idle XLU
    # slot; the kernel is HBM-bound so this is free.
    inter = jnp.sum(pt, axis=-1, keepdims=True)
    union = jnp.sum(p + t - pt, axis=-1, keepdims=True)

    # Exact reciprocal (EUP path); approx=True would exceed the test tolerance
    # and buys nothing on a bandwidth-bound kernel.
    iou_ref[...] = (inter + eps) * pl.reciprocal(union + eps, approx=False)


def _pick_batch_tile(b_pad, per_column_bytes):
    """Pick the batch tile (multiple of 128) for a padded batch of b_pad rows.

    Constraints / preferences:
      * tb divides b_pad exactly (no extra padded rows beyond round_up(B,128)).
      * Double-buffered inputs fit the VMEM budget, tb <= _MAX_BATCH_TILE.
      * Prefer >= 2 grid steps (so v7x's two TensorCores can both stream HBM),
        then the largest tile (amortizes per-grid-step overhead, bigger DMAs).
    """
    n128 = b_pad // 128
    tb_max = max(128, (_VMEM_INPUT_BUDGET // max(per_column_bytes, 1)) // 128 * 128)
    tb_max = min(tb_max, _MAX_BATCH_TILE, b_pad)

    best_key, best_tb = None, 128
    for d in range(1, n128 + 1):
        tb = d * 128
        if tb > tb_max:
            break
        if n128 % d:
            continue
        steps = n128 // d
        key = (steps >= 2, tb)
        if best_key is None or key > best_key:
            best_key, best_tb = key, tb
    return best_tb


def jaccard_loss(preds, targets, eps=EPS):
    """preds, targets: (batch_size, num_classes). Returns scalar float32 loss.

    Matches JaccardLoss.forward: sigmoid(preds), per-row soft IoU over the
    class axis, loss = 1 - mean(iou).

    Caller contract for best performance: pass preds as bf16 and targets as
    int8 (the kernel upcasts to f32 internally); this cuts HBM traffic ~2.4x.
    """
    assert preds.shape == targets.shape and preds.ndim == 2
    B, C = preds.shape

    # bool targets work, but cast here so Mosaic sees a plain int8 buffer.
    # (Callers should pass int8 directly to avoid this extra XLA pass.)
    if targets.dtype == jnp.bool_:
        targets = targets.astype(jnp.int8)

    p_item = jnp.dtype(preds.dtype).itemsize
    t_item = jnp.dtype(targets.dtype).itemsize

    # Pad the batch only to the next multiple of 128 (sublane granularity).
    b_pad = pl.cdiv(B, 128) * 128
    if b_pad != B:
        pad = b_pad - B
        # Padded rows give iou = eps/eps = 1 and are sliced off before the mean.
        preds = jnp.pad(preds, ((0, pad), (0, 0)))
        targets = jnp.pad(targets, ((0, pad), (0, 0)))

    # VMEM resident per batch column: 2 pipeline buffers x both inputs.
    per_column_bytes = 2 * C * (p_item + t_item)
    tb = _pick_batch_tile(b_pad, per_column_bytes)

    # Explicit, generation-aware VMEM limit: real per-step footprint + margin.
    in_bytes = per_column_bytes * tb
    out_bytes = 2 * tb * 128 * 4          # (tb, 1) f32 blocks are lane-padded in VMEM
    temp_bytes = 4 * tb * C * 4           # headroom for f32 intermediates
    vmem_limit = min(max(in_bytes + out_bytes + temp_bytes + (2 << 20), 16 << 20),
                     100 << 20)

    kernel = functools.partial(_jaccard_iou_kernel, eps=eps)

    iou = pl.pallas_call(
        kernel,
        out_shape=jax.ShapeDtypeStruct((b_pad, 1), jnp.float32),
        grid_spec=pltpu.PrefetchScalarGridSpec(
            num_scalar_prefetch=0,
            grid=(b_pad // tb,),
            in_specs=[
                pl.BlockSpec((tb, C), lambda i: (i, 0)),
                pl.BlockSpec((tb, C), lambda i: (i, 0)),
            ],
            out_specs=pl.BlockSpec((tb, 1), lambda i: (i, 0)),
        ),
        compiler_params=pltpu.CompilerParams(
            dimension_semantics=("parallel",),
            vmem_limit_bytes=vmem_limit),
    )(preds, targets)

    # Finalize in the wrapper: drop padded rows, mean over the true batch.
    iou_valid = iou[:B, 0]
    return 1.0 - jnp.mean(iou_valid)


def _jaccard_loss_ref(preds, targets, eps=EPS):
    p = jax.nn.sigmoid(preds.astype(jnp.float32))
    t = targets.astype(jnp.float32)
    inter = jnp.sum(p * t, axis=1)
    union = jnp.sum(p + t - p * t, axis=1)
    iou = (inter + eps) / (union + eps)
    return jnp.mean(1.0 - iou)


if __name__ == "__main__":
    key = jax.random.PRNGKey(0)
    k1, k2, k3, k4, k5, k6 = jax.random.split(key, 6)

    # Shape implied by the module: (batch_size, num_classes).
    batch_size, num_classes = 8, 16
    preds = jax.random.normal(k1, (batch_size, num_classes), dtype=jnp.float32)
    targets = jax.random.bernoulli(
        k2, 0.5, (batch_size, num_classes)).astype(jnp.float32)

    loss = jaccard_loss(preds, targets)
    jax.block_until_ready(loss)
    ref = _jaccard_loss_ref(preds, targets)
    assert jnp.allclose(loss, ref, atol=1e-5, rtol=1e-5), (loss, ref)

    # Non-tile-aligned shape exercises the round_up(B, 128) padding path.
    b2, c2 = 37, 10
    preds2 = jax.random.normal(k3, (b2, c2), dtype=jnp.float32)
    targets2 = jax.random.bernoulli(k4, 0.5, (b2, c2)).astype(jnp.float32)
    loss2 = jaccard_loss(preds2, targets2)
    jax.block_until_ready(loss2)
    ref2 = _jaccard_loss_ref(preds2, targets2)
    assert jnp.allclose(loss2, ref2, atol=1e-5, rtol=1e-5), (loss2, ref2)

    # Narrow-dtype contract: bf16 preds + int8 targets (halves HBM traffic;
    # the kernel upcasts to f32 internally).  Multi-step grid path.
    b3, c3 = 300, 24
    preds3 = jax.random.normal(k5, (b3, c3)).astype(jnp.bfloat16)
    targets3 = jax.random.bernoulli(k6, 0.5, (b3, c3)).astype(jnp.int8)
    loss3 = jaccard_loss(preds3, targets3)
    jax.block_until_ready(loss3)
    ref3 = _jaccard_loss_ref(preds3, targets3)
    assert jnp.allclose(loss3, ref3, atol=1e-5, rtol=1e-5), (loss3, ref3)

    print("KERNEL_OK")
</pallas_src>

<mosaic_0001>
module attributes {stable_mosaic.version = 11 : i64} {
  func.func @_jaccard_iou_kernel(%arg0: i32, %arg1: memref<128x16xf32, #tpu.memory_space<vmem>>, %arg2: memref<128x16xf32, #tpu.memory_space<vmem>>, %arg3: memref<128x1xf32, #tpu.memory_space<vmem>>) attributes {dimension_semantics = [#tpu.dimension_semantics<parallel>], iteration_bounds = array<i64: 1>, scalar_prefetch = 0 : i64, scratch_operands = 0 : i64, tpu.core_type = #tpu.core_type<tc>, window_params = [{transform_indices = @transform_0, window_bounds = array<i64: 128, 16>}, {transform_indices = @transform_1, window_bounds = array<i64: 128, 16>}, {transform_indices = @transform_2, window_bounds = array<i64: 128, 1>}]} {
    %c0 = arith.constant 0 : index
    %c0_0 = arith.constant 0 : index
    %0 = vector.load %arg1[%c0, %c0_0] : memref<128x16xf32, #tpu.memory_space<vmem>>, vector<128x16xf32>
    %1 = arith.negf %0 : vector<128x16xf32>
    %2 = math.exp %1 : vector<128x16xf32>
    %cst = arith.constant 1.000000e+00 : f32
    %3 = vector.broadcast %cst : f32 to vector<128x16xf32>
    %4 = arith.addf %3, %2 : vector<128x16xf32>
    %5 = arith.divf %3, %4 : vector<128x16xf32>
    %c0_1 = arith.constant 0 : index
    %c0_2 = arith.constant 0 : index
    %6 = vector.load %arg2[%c0_1, %c0_2] : memref<128x16xf32, #tpu.memory_space<vmem>>, vector<128x16xf32>
    %7 = arith.mulf %5, %6 : vector<128x16xf32>
    %cst_3 = arith.constant dense<0.000000e+00> : vector<128xf32>
    %8 = vector.multi_reduction <add>, %7, %cst_3 [1] : vector<128x16xf32> to vector<128xf32>
    %9 = vector.shape_cast %8 : vector<128xf32> to vector<128x1xf32>
    %10 = arith.addf %5, %6 : vector<128x16xf32>
    %11 = arith.subf %10, %7 : vector<128x16xf32>
    %cst_4 = arith.constant dense<0.000000e+00> : vector<128xf32>
    %12 = vector.multi_reduction <add>, %11, %cst_4 [1] : vector<128x16xf32> to vector<128xf32>
    %13 = vector.shape_cast %12 : vector<128xf32> to vector<128x1xf32>
    %cst_5 = arith.constant 9.99999997E-7 : f32
    %14 = vector.broadcast %cst_5 : f32 to vector<128x1xf32>
    %15 = arith.addf %9, %14 : vector<128x1xf32>
    %cst_6 = arith.constant 9.99999997E-7 : f32
    %16 = vector.broadcast %cst_6 : f32 to vector<128x1xf32>
    %17 = arith.addf %13, %16 : vector<128x1xf32>
    %18 = tpu.reciprocal %17 : vector<128x1xf32> -> vector<128x1xf32>
    %19 = arith.mulf %15, %18 : vector<128x1xf32>
    %c0_7 = arith.constant 0 : index
    %c0_8 = arith.constant 0 : index
    %20 = vector.load %arg3[%c0_7, %c0_8] : memref<128x1xf32, #tpu.memory_space<vmem>>, vector<128x1xf32>
    tpu.vector_store %arg3[%c0_7, %c0_8], %19 {strides = array<i32>} : memref<128x1xf32, #tpu.memory_space<vmem>>, vector<128x1xf32>,
    return
  }
  func.func @transform_0(%arg0: i32) -> (i32, i32) {
    %c0_i32 = arith.constant 0 : i32
    %c0_i32_0 = arith.constant 0 : i32
    return %arg0, %c0_i32 : i32, i32
  }
  func.func @transform_1(%arg0: i32) -> (i32, i32) {
    %c0_i32 = arith.constant 0 : i32
    %c0_i32_0 = arith.constant 0 : i32
    return %arg0, %c0_i32 : i32, i32
  }
  func.func @transform_2(%arg0: i32) -> (i32, i32) {
    %c0_i32 = arith.constant 0 : i32
    %c0_i32_0 = arith.constant 0 : i32
    return %arg0, %c0_i32 : i32, i32
  }
}

</mosaic_0001>

<bundles_post_ra>
// kernel: tpu_custom_call.1
= control target key start
LH: loop header
LB: loop body
LE: loop exit
PB: predicated region body
PF: predicated region fallthrough
CT: control target
= control target key end

     0   :  { %vm155_vm0 = vcmask 130048   ;;  %vm348_vm1 = vcmask 7168   ;;  %s712_s0 = inlined_call_operand.vmem [shape: f32[128,16], index: 0, kind: input, shape index: {}]   ;;  %s713_s1 = inlined_call_operand.vmem [shape: f32[128,16], index: 1, kind: input, shape index: {}]   ;;  %s714_s2 = inlined_call_operand.vmem [shape: f32[128,1], index: 2, kind: output, shape index: {}]  }
   0x1   :  { %v12_v0 = vld [vmem:[%s712_s0 + $0x8] sm:$0xff]  ;;  %v11_v1 = vld [vmem:[%s712_s0] sm:$0xff]  ;;  %v14_v4 = vld [vmem:[%s712_s0 + $0x18] sm:$0xff] }
   0x2   :  { %v370_v2 = vmul.f32 -1.442695, %v12_v0  ;;  %v369_v3 = vmul.f32 -1.442695, %v11_v1  ;;  %v372_v5 = vmul.f32 -1.442695, %v14_v4 }
   0x3   :  { %v13_v6 = vld [vmem:[%s712_s0 + $0x10] sm:$0xff]  ;;  %v16_v8 = vld [vmem:[%s712_s0 + $0x28] sm:$0xff]  ;;  %v15_v9 = vld [vmem:[%s712_s0 + $0x20] sm:$0xff] }
   0x4   :  { %385 = vpow2.f32 %v370_v2  ;;  %v371_v7 = vmul.f32 -1.442695, %v13_v6  ;;  %v374_v10 = vmul.f32 -1.442695, %v16_v8  ;;  %v373_v11 = vmul.f32 -1.442695, %v15_v9 }
   0x5   :  { %387 = vpow2.f32 %v369_v3  ;;  %v18_v12 = vld [vmem:[%s712_s0 + $0x38] sm:$0xff]  ;;  %v17_v14 = vld [vmem:[%s712_s0 + $0x30] sm:$0xff]  ;;  %v20_v16 = vld [vmem:[%s712_s0 + $0x48] sm:$0xff] }
   0x6   :  { %389 = vpow2.f32 %v372_v5  ;;  %v376_v13 = vmul.f32 -1.442695, %v18_v12  ;;  %v375_v15 = vmul.f32 -1.442695, %v17_v14  ;;  %v19_v17 = vld [vmem:[%s712_s0 + $0x40] sm:$0xff]  ;;  %v22_v18 = vld [vmem:[%s712_s0 + $0x58] sm:$0xff] }
   0x7   :  { %391 = vpow2.f32 %v371_v7  ;;  %v378_v19 = vmul.f32 -1.442695, %v20_v16  ;;  %v21_v20 = vld [vmem:[%s712_s0 + $0x50] sm:$0xff]  ;;  %v377_v21 = vmul.f32 -1.442695, %v19_v17  ;;  %v24_v22 = vld [vmem:[%s712_s0 + $0x68] sm:$0xff] }
   0x8   :  { %393 = vpow2.f32 %v374_v10  ;;  %v380_v23 = vmul.f32 -1.442695, %v22_v18  ;;  %v23_v24 = vld [vmem:[%s712_s0 + $0x60] sm:$0xff]  ;;  %v379_v25 = vmul.f32 -1.442695, %v21_v20  ;;  %v26_v29 = vld [vmem:[%s712_s0 + $0x78] sm:$0xff] }
   0x9   :  { %395 = vpow2.f32 %v373_v11  ;;  %v382_v26 = vmul.f32 -1.442695, %v24_v22  ;;  %v381_v27 = vmul.f32 -1.442695, %v23_v24  ;;  %v25_v32 = vld [vmem:[%s712_s0 + $0x70] sm:$0xff]  ;;  %v124_v54 = vld [vmem:[%s713_s1 + $0x8] sm:$0xff] }
   0xa   :  { %397 = vpow2.f32 %v376_v13  ;;  %v384_v37 = vmul.f32 -1.442695, %v26_v29  ;;  %v383_v40 = vmul.f32 -1.442695, %v25_v32  ;;  %v123_v57 = vld [vmem:[%s713_s1] sm:$0xff]  ;;  %v126_v60 = vld [vmem:[%s713_s1 + $0x18] sm:$0xff] }
   0xb   :  { %399 = vpow2.f32 %v375_v15  ;;  %v125_v63 = vld [vmem:[%s713_s1 + $0x10] sm:$0xff] }
   0xc   :  { %401 = vpow2.f32 %v378_v19 }
   0xd   :  { %403 = vpow2.f32 %v377_v21  ;;  %v128_v21 = vld [vmem:[%s713_s1 + $0x28] sm:$0xff] }
   0xe   :  { %405 = vpow2.f32 %v380_v23  ;;  %v127_v23 = vld [vmem:[%s713_s1 + $0x20] sm:$0xff] }
   0xf   :  { %407 = vpow2.f32 %v379_v25 }
  0x10   :  { %409 = vpow2.f32 %v382_v26 }
  0x11   :  { %v386_v28 = vpop.eup %385  ;;  %411 = vpow2.f32 %v381_v27 }
  0x12   :  { %v388_v30 = vpop.eup %387  ;;  %v76_v31 = vadd.f32 1.0, %v386_v28 }
  0x13   :  { %v390_v33 = vpop.eup %389  ;;  %v75_v34 = vadd.f32 1.0, %v388_v30 }
  0x14   :  { %v392_v35 = vpop.eup %391  ;;  %413 = vrcp.f32 %v76_v31  ;;  %v78_v36 = vadd.f32 1.0, %v390_v33 }
  0x15   :  { %v394_v38 = vpop.eup %393  ;;  %415 = vrcp.f32 %v75_v34  ;;  %v77_v39 = vadd.f32 1.0, %v392_v35  ;;  %v130_v35 = vld [vmem:[%s713_s1 + $0x38] sm:$0xff] }
  0x16   :  { %v396_v41 = vpop.eup %395  ;;  %417 = vrcp.f32 %v78_v36  ;;  %v80_v42 = vadd.f32 1.0, %v394_v38 }
  0x17   :  { %v398_v43 = vpop.eup %397  ;;  %419 = vrcp.f32 %v77_v39  ;;  %v79_v44 = vadd.f32 1.0, %v396_v41 }
  0x18   :  { %v400_v45 = vpop.eup %399  ;;  %421 = vpow2.f32 %v384_v37  ;;  %v82_v46 = vadd.f32 1.0, %v398_v43  ;;  %v129_v37 = vld [vmem:[%s713_s1 + $0x30] sm:$0xff] }
  0x19   :  { %423 = vpow2.f32 %v383_v40  ;;  %v402_v47 = vpop.eup %401  ;;  %v81_v48 = vadd.f32 1.0, %v400_v45 }
  0x1a   :  { %425 = vrcp.f32 %v80_v42  ;;  %v404_v49 = vpop.eup %403  ;;  %v84_v52 = vadd.f32 1.0, %v402_v47  ;;  %v132_v47 = vld [vmem:[%s713_s1 + $0x48] sm:$0xff] }
  0x1b   :  { %427 = vrcp.f32 %v79_v44  ;;  %v406_v50 = vpop.eup %405  ;;  %v83_v55 = vadd.f32 1.0, %v404_v49  ;;  %v131_v49 = vld [vmem:[%s713_s1 + $0x40] sm:$0xff] }
  0x1c   :  { %v408_v51 = vpop.eup %407  ;;  %429 = vrcp.f32 %v82_v46  ;;  %v86_v58 = vadd.f32 1.0, %v406_v50 }
  0x1d   :  { %v410_v53 = vpop.eup %409  ;;  %431 = vrcp.f32 %v81_v48  ;;  %v85_v0 = vadd.f32 1.0, %v408_v51 }
  0x1e   :  { %v412_v56 = vpop.eup %411  ;;  %433 = vrcp.f32 %v84_v52  ;;  %v88_v7 = vadd.f32 1.0, %v410_v53 }
  0x1f   :  { %435 = vrcp.f32 %v83_v55  ;;  %v87_v12 = vadd.f32 1.0, %v412_v56 }
  0x20   :  { %437 = vrcp.f32 %v86_v58 }
  0x21   :  { %v414_v59 = vpop.eup %413  ;;  %439 = vrcp.f32 %v85_v0 }
  0x22   :  { %v416_v61 = vpop.eup %415  ;;  %v140_v62 = vmul.f32 %v414_v59, %v124_v54  ;;  %v205_v17 = vadd.f32 %v414_v59, %v124_v54  ;;  %441 = vrcp.f32 %v88_v7 }
  0x23   :  { %v418_v1 = vpop.eup %417  ;;  %v139_v2 = vmul.f32 %v416_v61, %v123_v57  ;;  %v204_v3 = vadd.f32 %v416_v61, %v123_v57  ;;  %443 = vrcp.f32 %v87_v12  ;;  %v133_v61 = vld [vmem:[%s713_s1 + $0x50] sm:$0xff] }
  0x24   :  { %v420_v4 = vpop.eup %419  ;;  %v159_v5 = vsel %vm155_vm0, %v140_v62, 0.0  ;;  %v142_v6 = vmul.f32 %v418_v1, %v126_v60  ;;  %v207_v15 = vadd.f32 %v418_v1, %v126_v60  ;;  %v221_v32 = vsub.f32 %v205_v17, %v140_v62  ;;  %v134_v60 = vld [vmem:[%s713_s1 + $0x58] sm:$0xff] }
  0x25   :  { %v422_v8 = vpop.eup %421  ;;  %160 = vadd.xlane.f32.xlu1 %v159_v5  ;;  %v156_v9 = vsel %vm155_vm0, %v139_v2, 0.0  ;;  %v141_v10 = vmul.f32 %v420_v4, %v125_v63  ;;  %v206_v11 = vadd.f32 %v420_v4, %v125_v63  ;;  %v220_v20 = vsub.f32 %v204_v3, %v139_v2 }
  0x26   :  { %v424_v13 = vpop.eup %423  ;;  %157 = vadd.xlane.f32.xlu0 %v156_v9  ;;  %v165_v14 = vsel %vm155_vm0, %v142_v6, 0.0  ;;  %v90_v24 = vadd.f32 1.0, %v422_v8  ;;  %v223_v27 = vsub.f32 %v207_v15, %v142_v6  ;;  %v239_v43 = vsel %vm155_vm0, %v221_v32, 0.0  ;;  %v136_v8 = vld [vmem:[%s713_s1 + $0x68] sm:$0xff]  ;;  %v135_v9 = vld [vmem:[%s713_s1 + $0x60] sm:$0xff] }
  0x27   :  { %v426_v16 = vpop.eup %425  ;;  %v162_v18 = vsel %vm155_vm0, %v141_v10, 0.0  ;;  %v222_v19 = vsub.f32 %v206_v11, %v141_v10  ;;  %v89_v25 = vadd.f32 1.0, %v424_v13  ;;  %v236_v31 = vsel %vm155_vm0, %v220_v20, 0.0  ;;  %v138_v20 = vld [vmem:[%s713_s1 + $0x78] sm:$0xff] }
  0x28   :  { %v428_v22 = vpop.eup %427  ;;  %v567_v28 = vmul.f32 %v426_v16, %v128_v21  ;;  %v209_v29 = vadd.f32 %v426_v16, %v128_v21  ;;  %445 = vrcp.f32 %v90_v24  ;;  %v245_v38 = vsel %vm155_vm0, %v223_v27, 0.0  ;;  %v137_v21 = vld [vmem:[%s713_s1 + $0x70] sm:$0xff] }
  0x29   :  { %166 = vadd.xlane.f32.xlu1 %v165_v14  ;;  %v242_v26 = vsel %vm155_vm0, %v222_v19, 0.0  ;;  %v430_v30 = vpop.eup %429  ;;  %v570_v33 = vmul.f32 %v428_v22, %v127_v23  ;;  %v208_v34 = vadd.f32 %v428_v22, %v127_v23  ;;  %447 = vrcp.f32 %v89_v25 }
  0x2a   :  { %163 = vadd.xlane.f32.xlu0 %v162_v18  ;;  %v432_v36 = vpop.eup %431  ;;  %v225_v39 = vsub.f32 %v209_v29, %v567_v28  ;;  %v580_v40 = vmul.f32 %v430_v30, %v130_v35  ;;  %v211_v41 = vadd.f32 %v430_v30, %v130_v35 }
  0x2b   :  { %v434_v42 = vpop.eup %433  ;;  %v224_v44 = vsub.f32 %v208_v34, %v570_v33  ;;  %v584_v45 = vmul.f32 %v432_v36, %v129_v37  ;;  %v210_v46 = vadd.f32 %v432_v36, %v129_v37 }
  0x2c   :  { %v436_v48 = vpop.eup %435  ;;  %v251_v51 = vsel %vm155_vm0, %v225_v39, 0.0  ;;  %v227_v52 = vsub.f32 %v211_v41, %v580_v40  ;;  %v594_v53 = vmul.f32 %v434_v42, %v132_v47  ;;  %v213_v54 = vadd.f32 %v434_v42, %v132_v47 }
  0x2d   :  { %243 = vadd.xlane.f32.xlu1 %v242_v26  ;;  %v438_v50 = vpop.eup %437  ;;  %v248_v56 = vsel %vm155_vm0, %v224_v44, 0.0  ;;  %v226_v57 = vsub.f32 %v210_v46, %v584_v45  ;;  %v598_v58 = vmul.f32 %v436_v48, %v131_v49  ;;  %v212_v59 = vadd.f32 %v436_v48, %v131_v49 }
  0x2e   :  { %237 = vadd.xlane.f32.xlu0 %v236_v31  ;;  %v440_v55 = vpop.eup %439  ;;  %v257_v0 = vsel %vm155_vm0, %v227_v52, 0.0  ;;  %v229_v1 = vsub.f32 %v213_v54, %v594_v53  ;;  %v150_v2 = vmul.f32 %v438_v50, %v134_v60  ;;  %v215_v3 = vadd.f32 %v438_v50, %v134_v60 }
  0x2f   :  { %v442_v62 = vpop.eup %441  ;;  %v254_v4 = vsel %vm155_vm0, %v226_v57, 0.0  ;;  %v228_v5 = vsub.f32 %v212_v59, %v598_v58  ;;  %v149_v6 = vmul.f32 %v440_v55, %v133_v61  ;;  %v214_v7 = vadd.f32 %v440_v55, %v133_v61 }
  0x30   :  { %v444_v63 = vpop.eup %443  ;;  %v263_v12 = vsel %vm155_vm0, %v229_v1, 0.0  ;;  %v231_v13 = vsub.f32 %v215_v3, %v150_v2  ;;  %v152_v14 = vmul.f32 %v442_v62, %v136_v8  ;;  %v217_v15 = vadd.f32 %v442_v62, %v136_v8 }
  0x31   :  { %246 = vadd.xlane.f32.xlu1 %v245_v38  ;;  %v260_v16 = vsel %vm155_vm0, %v228_v5, 0.0  ;;  %v230_v17 = vsub.f32 %v214_v7, %v149_v6  ;;  %v151_v18 = vmul.f32 %v444_v63, %v135_v9  ;;  %v216_v19 = vadd.f32 %v444_v63, %v135_v9 }
  0x32   :  { %240 = vadd.xlane.f32.xlu0 %v239_v43  ;;  %v269_v22 = vsel %vm155_vm0, %v231_v13, 0.0  ;;  %v233_v23 = vsub.f32 %v217_v15, %v152_v14  ;;  %v171_v38 = vsel %vm155_vm0, %v567_v28, 0.0  ;;  %v168_v39 = vsel %vm155_vm0, %v570_v33, 0.0 }
  0x33   :  { %v266_v26 = vsel %vm155_vm0, %v230_v17, 0.0  ;;  %v232_v27 = vsub.f32 %v216_v19, %v151_v18  ;;  %v177_v41 = vsel %vm155_vm0, %v580_v40, 0.0  ;;  %v174_v42 = vsel %vm155_vm0, %v584_v45, 0.0 }
  0x34   :  { %v275_v31 = vsel %vm155_vm0, %v233_v23, 0.0  ;;  %v183_v43 = vsel %vm155_vm0, %v594_v53, 0.0  ;;  %v180_v44 = vsel %vm155_vm0, %v598_v58, 0.0  ;;  %v189_v28 = vsel %vm155_vm0, %v150_v2, 0.0 }
  0x35   :  { %252 = vadd.xlane.f32.xlu1 %v251_v51  ;;  %v446_v10 = vpop.eup %445  ;;  %v272_v34 = vsel %vm155_vm0, %v232_v27, 0.0  ;;  %v186_v33 = vsel %vm155_vm0, %v149_v6, 0.0  ;;  %v195_v40 = vsel %vm155_vm0, %v152_v14, 0.0  ;;  %v192_v45 = vsel %vm155_vm0, %v151_v18, 0.0 }
  0x36   :  { %249 = vadd.xlane.f32.xlu0 %v248_v56  ;;  %v448_v11 = vpop.eup %447  ;;  %v154_v24 = vmul.f32 %v446_v10, %v138_v20  ;;  %v219_v25 = vadd.f32 %v446_v10, %v138_v20 }
  0x37   :  { %v153_v29 = vmul.f32 %v448_v11, %v137_v21  ;;  %v218_v30 = vadd.f32 %v448_v11, %v137_v21 }
  0x38   :  { %v235_v32 = vsub.f32 %v219_v25, %v154_v24  ;;  %v201_v46 = vsel %vm155_vm0, %v154_v24, 0.0 }
  0x39   :  { %258 = vadd.xlane.f32.xlu1 %v257_v0  ;;  %v234_v35 = vsub.f32 %v218_v30, %v153_v29  ;;  %v198_v47 = vsel %vm155_vm0, %v153_v29, 0.0 }
  0x3a   :  { %255 = vadd.xlane.f32.xlu0 %v254_v4  ;;  %v281_v36 = vsel %vm155_vm0, %v235_v32, 0.0 }
  0x3b   :  { %v278_v37 = vsel %vm155_vm0, %v234_v35, 0.0 }
  0x3d   :  { %264 = vadd.xlane.f32.xlu1 %v263_v12 }
  0x3e   :  { %261 = vadd.xlane.f32.xlu0 %v260_v16 }
  0x41   :  { %270 = vadd.xlane.f32.xlu1 %v269_v22 }
  0x42   :  { %267 = vadd.xlane.f32.xlu0 %v266_v26 }
  0x45   :  { %276 = vadd.xlane.f32.xlu1 %v275_v31 }
  0x46   :  { %273 = vadd.xlane.f32.xlu0 %v272_v34 }
  0x49   :  { %282 = vadd.xlane.f32.xlu1 %v281_v36 }
  0x4a   :  { %279 = vadd.xlane.f32.xlu0 %v278_v37 }
  0x4d   :  { %172 = vadd.xlane.f32.xlu1 %v171_v38 }
  0x4e   :  { %169 = vadd.xlane.f32.xlu0 %v168_v39 }
  0x51   :  { %178 = vadd.xlane.f32.xlu1 %v177_v41 }
  0x52   :  { %175 = vadd.xlane.f32.xlu0 %v174_v42 }
  0x55   :  { %184 = vadd.xlane.f32.xlu1 %v183_v43 }
  0x56   :  { %181 = vadd.xlane.f32.xlu0 %v180_v44 }
  0x59   :  { %190 = vadd.xlane.f32.xlu1 %v189_v28 }
  0x5a   :  { %187 = vadd.xlane.f32.xlu0 %v186_v33 }
  0x5d   :  { %196 = vadd.xlane.f32.xlu1 %v195_v40 }
  0x5e   :  { %193 = vadd.xlane.f32.xlu0 %v192_v45 }
  0x61   :  { %202 = vadd.xlane.f32.xlu1 %v201_v46 }
  0x62   :  { %199 = vadd.xlane.f32.xlu0 %v198_v47 }
  0xae   :  { %v161_v48 = vpop.xlane.xlu1 %160 }
  0xaf   :  { %v158_v49 = vpop.xlane.xlu0 %157  ;;  %v285_v12 = vadd.f32 1e-06, %v161_v48 }
  0xb0   :  { %v284_v2 = vadd.f32 1e-06, %v158_v49 }
  0xb2   :  { %v167_v50 = vpop.xlane.xlu1 %166 }
  0xb3   :  { %v164_v51 = vpop.xlane.xlu0 %163  ;;  %v287_v10 = vadd.f32 1e-06, %v167_v50 }
  0xb4   :  { %v286_v0 = vadd.f32 1e-06, %v164_v51 }
  0xb6   :  { %v244_v52 = vpop.xlane.xlu1 %243 }
  0xb7   :  { %v302_v53 = vadd.f32 1e-06, %v244_v52  ;;  %v238_v54 = vpop.xlane.xlu0 %237 }
  0xb8   :  { %v300_v55 = vadd.f32 1e-06, %v238_v54 }
  0xb9   :  { %449 = vrcp.f32 %v302_v53 }
  0xba   :  { %451 = vrcp.f32 %v300_v55  ;;  %v247_v56 = vpop.xlane.xlu1 %246 }
  0xbb   :  { %v303_v57 = vadd.f32 1e-06, %v247_v56  ;;  %v241_v58 = vpop.xlane.xlu0 %240 }
  0xbc   :  { %v301_v59 = vadd.f32 1e-06, %v241_v58 }
  0xbd   :  { %453 = vrcp.f32 %v303_v57 }
  0xbe   :  { %455 = vrcp.f32 %v301_v59  ;;  %v253_v60 = vpop.xlane.xlu1 %252 }
  0xbf   :  { %v250_v61 = vpop.xlane.xlu0 %249  ;;  %v305_v6 = vadd.f32 1e-06, %v253_v60 }
  0xc0   :  { %v304_v9 = vadd.f32 1e-06, %v250_v61 }
  0xc1   :  { %457 = vrcp.f32 %v305_v6 }
  0xc2   :  { %v259_v62 = vpop.xlane.xlu1 %258  ;;  %459 = vrcp.f32 %v304_v9 }
  0xc3   :  { %v256_v63 = vpop.xlane.xlu0 %255  ;;  %v307_v16 = vadd.f32 1e-06, %v259_v62 }
  0xc4   :  { %v306_v19 = vadd.f32 1e-06, %v256_v63 }
  0xc5   :  { %461 = vrcp.f32 %v307_v16 }
  0xc6   :  { %v450_v1 = vpop.eup %449  ;;  %v265_v3 = vpop.xlane.xlu1 %264  ;;  %463 = vrcp.f32 %v306_v19 }
  0xc7   :  { %v452_v4 = vpop.eup %451  ;;  %v334_v5 = vmul.f32 %v450_v1, %v286_v0  ;;  %v262_v7 = vpop.xlane.xlu0 %261  ;;  %v309_v21 = vadd.f32 1e-06, %v265_v3 }
  0xc8   :  { %v332_v8 = vmul.f32 %v452_v4, %v284_v2  ;;  %v308_v23 = vadd.f32 1e-06, %v262_v7 }
  0xc9   :  { %351 = vst.msk [vmem:[%s714_s2 + $0x10] sm:$0xff] %vm348_vm1, %v334_v5  ;;  %465 = vrcp.f32 %v309_v21 }
  0xca   :  { %v454_v11 = vpop.eup %453  ;;  %349 = vst.msk [vmem:[%s714_s2] sm:$0xff] %vm348_vm1, %v332_v8  ;;  %v271_v13 = vpop.xlane.xlu1 %270  ;;  %467 = vrcp.f32 %v308_v23 }
  0xcb   :  { %v456_v14 = vpop.eup %455  ;;  %v335_v15 = vmul.f32 %v454_v11, %v287_v10  ;;  %v268_v17 = vpop.xlane.xlu0 %267  ;;  %v311_v25 = vadd.f32 1e-06, %v271_v13 }
  0xcc   :  { %v333_v18 = vmul.f32 %v456_v14, %v285_v12  ;;  %v310_v27 = vadd.f32 1e-06, %v268_v17 }
  0xcd   :  { %352 = vst.msk [vmem:[%s714_s2 + $0x18] sm:$0xff] %vm348_vm1, %v335_v15  ;;  %469 = vrcp.f32 %v311_v25 }
  0xce   :  { %350 = vst.msk [vmem:[%s714_s2 + $0x8] sm:$0xff] %vm348_vm1, %v333_v18  ;;  %v277_v20 = vpop.xlane.xlu1 %276  ;;  %v458_v34 = vpop.eup %457  ;;  %471 = vrcp.f32 %v310_v27 }
  0xcf   :  { %v274_v22 = vpop.xlane.xlu0 %273  ;;  %v313_v30 = vadd.f32 1e-06, %v277_v20  ;;  %v460_v37 = vpop.eup %459 }
  0xd0   :  { %v312_v35 = vadd.f32 1e-06, %v274_v22 }
  0xd1   :  { %473 = vrcp.f32 %v313_v30 }
  0xd2   :  { %v283_v24 = vpop.xlane.xlu1 %282  ;;  %v462_v28 = vpop.eup %461  ;;  %475 = vrcp.f32 %v312_v35 }
  0xd3   :  { %v280_v26 = vpop.xlane.xlu0 %279  ;;  %v315_v42 = vadd.f32 1e-06, %v283_v24  ;;  %v464_v45 = vpop.eup %463 }
  0xd4   :  { %v314_v33 = vadd.f32 1e-06, %v280_v26 }
  0xd5   :  { %477 = vrcp.f32 %v315_v42 }
  0xd6   :  { %v173_v29 = vpop.xlane.xlu1 %172  ;;  %v466_v51 = vpop.eup %465  ;;  %479 = vrcp.f32 %v314_v33 }
  0xd7   :  { %v289_v31 = vadd.f32 1e-06, %v173_v29  ;;  %v170_v32 = vpop.xlane.xlu0 %169  ;;  %v468_v53 = vpop.eup %467 }
  0xd8   :  { %v288_v36 = vadd.f32 1e-06, %v170_v32 }
  0xd9   :  { %v337_v38 = vmul.f32 %v458_v34, %v289_v31 }
  0xda   :  { %v336_v39 = vmul.f32 %v460_v37, %v288_v36  ;;  %v179_v41 = vpop.xlane.xlu1 %178  ;;  %v470_v59 = vpop.eup %469 }
  0xdb   :  { %354 = vst.msk [vmem:[%s714_s2 + $0x28] sm:$0xff] %vm348_vm1, %v337_v38  ;;  %v291_v43 = vadd.f32 1e-06, %v179_v41  ;;  %v176_v44 = vpop.xlane.xlu0 %175  ;;  %v472_v61 = vpop.eup %471 }
  0xdc   :  { %353 = vst.msk [vmem:[%s714_s2 + $0x20] sm:$0xff] %vm348_vm1, %v336_v39  ;;  %v290_v40 = vadd.f32 1e-06, %v176_v44 }
  0xdd   :  { %v339_v46 = vmul.f32 %v462_v28, %v291_v43 }
  0xde   :  { %v338_v47 = vmul.f32 %v464_v45, %v290_v40  ;;  %v185_v48 = vpop.xlane.xlu1 %184  ;;  %v474_v3 = vpop.eup %473 }
  0xdf   :  { %356 = vst.msk [vmem:[%s714_s2 + $0x38] sm:$0xff] %vm348_vm1, %v339_v46  ;;  %v293_v49 = vadd.f32 1e-06, %v185_v48  ;;  %v182_v50 = vpop.xlane.xlu0 %181  ;;  %v476_v5 = vpop.eup %475 }
  0xe0   :  { %355 = vst.msk [vmem:[%s714_s2 + $0x30] sm:$0xff] %vm348_vm1, %v338_v47  ;;  %v292_v52 = vadd.f32 1e-06, %v182_v50 }
  0xe1   :  { %v341_v54 = vmul.f32 %v466_v51, %v293_v49 }
  0xe2   :  { %v340_v55 = vmul.f32 %v468_v53, %v292_v52  ;;  %v191_v56 = vpop.xlane.xlu1 %190  ;;  %v478_v11 = vpop.eup %477 }
  0xe3   :  { %358 = vst.msk [vmem:[%s714_s2 + $0x48] sm:$0xff] %vm348_vm1, %v341_v54  ;;  %v295_v57 = vadd.f32 1e-06, %v191_v56  ;;  %v188_v58 = vpop.xlane.xlu0 %187  ;;  %v480_v13 = vpop.eup %479 }
  0xe4   :  { %357 = vst.msk [vmem:[%s714_s2 + $0x40] sm:$0xff] %vm348_vm1, %v340_v55  ;;  %v294_v60 = vadd.f32 1e-06, %v188_v58 }
  0xe5   :  { %v343_v62 = vmul.f32 %v470_v59, %v295_v57 }
  0xe6   :  { %v342_v63 = vmul.f32 %v472_v61, %v294_v60  ;;  %v197_v0 = vpop.xlane.xlu1 %196 }
  0xe7   :  { %360 = vst.msk [vmem:[%s714_s2 + $0x58] sm:$0xff] %vm348_vm1, %v343_v62  ;;  %v297_v1 = vadd.f32 1e-06, %v197_v0  ;;  %v194_v2 = vpop.xlane.xlu0 %193 }
  0xe8   :  { %359 = vst.msk [vmem:[%s714_s2 + $0x50] sm:$0xff] %vm348_vm1, %v342_v63  ;;  %v296_v4 = vadd.f32 1e-06, %v194_v2 }
  0xe9   :  { %v345_v6 = vmul.f32 %v474_v3, %v297_v1 }
  0xea   :  { %v344_v7 = vmul.f32 %v476_v5, %v296_v4  ;;  %v203_v8 = vpop.xlane.xlu1 %202 }
  0xeb   :  { %362 = vst.msk [vmem:[%s714_s2 + $0x68] sm:$0xff] %vm348_vm1, %v345_v6  ;;  %v299_v9 = vadd.f32 1e-06, %v203_v8  ;;  %v200_v10 = vpop.xlane.xlu0 %199 }
  0xec   :  { %361 = vst.msk [vmem:[%s714_s2 + $0x60] sm:$0xff] %vm348_vm1, %v344_v7  ;;  %v298_v12 = vadd.f32 1e-06, %v200_v10 }
  0xed   :  { %v347_v14 = vmul.f32 %v478_v11, %v299_v9 }
  0xee   :  { %v346_v15 = vmul.f32 %v480_v13, %v298_v12 }
  0xef   :  { %364 = vst.msk [vmem:[%s714_s2 + $0x78] sm:$0xff] %vm348_vm1, %v347_v14 }
  0xf0   :  { %363 = vst.msk [vmem:[%s714_s2 + $0x70] sm:$0xff] %vm348_vm1, %v346_v15 }

</bundles_post_ra>
